<compile_context>
chip_gen: v6e
topology: v6e:2x2x1
jax: 0.10.0
libtpu: 0.0.40
codegen_flags: <defaults>
</compile_context>

<pallas_src>
import functools
import math

import jax
import jax.numpy as jnp
from jax.experimental import pallas as pl
from jax.experimental.pallas import tpu as pltpu


def _round_up(x, m):
    return ((x + m - 1) // m) * m


def _apply_activation(y, act_fun):
    # y is f32.
    if act_fun in (None, "none", "None", "NONE"):
        return y
    if act_fun == "relu":
        return jnp.maximum(y, 0.0)
    if act_fun == "lrelu":
        return jnp.where(y >= 0.0, y, 0.01 * y)  # nn.LeakyReLU default slope
    if act_fun == "selu":
        alpha = 1.6732632423543772848170429916717
        scale = 1.0507009873554804934193349852946
        return scale * jnp.where(y > 0.0, y, alpha * (jnp.exp(y) - 1.0))
    if act_fun == "silu":
        return y * jax.nn.sigmoid(y)
    if act_fun == "sigmoid":
        return jax.nn.sigmoid(y)
    if act_fun == "tanh":
        return jnp.tanh(y)
    # unknown -> default to ReLU (matches the PyTorch module's fallback)
    return jnp.maximum(y, 0.0)


# ---------------------------------------------------------------------------
# Kernels
# ---------------------------------------------------------------------------

def _dense_bn_kernel(x_ref, w_ref, b_ref, g_ref, beta_ref, o_ref, acc_ref,
                     *, act_fun):
    """grid = (H_tiles, K_tiles). Full batch resident per tile (exact BN)."""
    k = pl.program_id(1)

    @pl.when(k == 0)
    def _():
        acc_ref[...] = jnp.zeros_like(acc_ref)

    # MXU matmul in the native input dtype, f32 accumulation.
    acc_ref[...] += jnp.dot(x_ref[...], w_ref[...],
                            preferred_element_type=jnp.float32)

    @pl.when(k == pl.num_programs(1) - 1)
    def _():
        y = acc_ref[...] + b_ref[...].astype(jnp.float32)
        # BatchNorm1d, track_running_stats=False: batch stats, biased var.
        mean = jnp.mean(y, axis=0, keepdims=True)
        centered = y - mean
        var = jnp.mean(centered * centered, axis=0, keepdims=True)
        y = centered * jax.lax.rsqrt(var + 1e-5)
        y = y * g_ref[...].astype(jnp.float32) + beta_ref[...].astype(jnp.float32)
        y = _apply_activation(y, act_fun)
        # Dropout(p=0.0) == identity.
        o_ref[...] = y.astype(o_ref.dtype)


def _dense_kernel(x_ref, w_ref, b_ref, o_ref, acc_ref, *, act_fun):
    """grid = (B_tiles, H_tiles, K_tiles). No batch-wide reduction needed."""
    k = pl.program_id(2)

    @pl.when(k == 0)
    def _():
        acc_ref[...] = jnp.zeros_like(acc_ref)

    acc_ref[...] += jnp.dot(x_ref[...], w_ref[...],
                            preferred_element_type=jnp.float32)

    @pl.when(k == pl.num_programs(2) - 1)
    def _():
        y = acc_ref[...] + b_ref[...].astype(jnp.float32)
        y = _apply_activation(y, act_fun)
        o_ref[...] = y.astype(o_ref.dtype)


# ---------------------------------------------------------------------------
# Wrapper
# ---------------------------------------------------------------------------

def custom_dense(x, weight_t, bias, gamma=None, beta=None, *,
                 act_fun="relu", batch_norm=False):
    """Fused CustomDense forward.

    x:        (B, D_in)
    weight_t: (D_in, H)  (PyTorch linear weight transposed)
    bias:     (H,) or (1, H)
    gamma:    (H,) or (1, H)   (BatchNorm weight; required if batch_norm)
    beta:     (H,) or (1, H)   (BatchNorm bias;   required if batch_norm)
    """
    B, D_in = x.shape
    H = weight_t.shape[1]
    out_dtype = x.dtype

    bias = jnp.reshape(bias, (1, H))

    # --- tile sizes (lane-dense output, MXU-friendly) ------------------------
    tn = 256 if H >= 256 else _round_up(H, 128)          # output lanes
    tk = 512 if D_in >= 512 else _round_up(D_in, 128)    # reduction
    H_pad = _round_up(H, tn)
    K_pad = _round_up(D_in, tk)

    # --- zero-pad K and H in the wrapper (sliced off after) ------------------
    x_p = jnp.pad(x, ((0, 0), (0, K_pad - D_in)))
    w_p = jnp.pad(weight_t, ((0, K_pad - D_in), (0, H_pad - H)))
    b_p = jnp.pad(bias, ((0, 0), (0, H_pad - H)))

    flops = 2 * B * D_in * H
    transc = B * H if act_fun in ("selu", "silu", "sigmoid", "tanh") else 0
    itemsize = jnp.dtype(out_dtype).itemsize
    cost = pl.CostEstimate(
        flops=flops,
        transcendentals=transc,
        bytes_accessed=(x.size + weight_t.size + B * H) * itemsize,
    )

    if batch_norm:
        gamma = jnp.reshape(gamma, (1, H))
        beta = jnp.reshape(beta, (1, H))
        g_p = jnp.pad(gamma, ((0, 0), (0, H_pad - H)), constant_values=1.0)
        be_p = jnp.pad(beta, ((0, 0), (0, H_pad - H)))

        grid = (H_pad // tn, K_pad // tk)
        kernel = functools.partial(_dense_bn_kernel, act_fun=act_fun)
        out_p = pl.pallas_call(
            kernel,
            out_shape=jax.ShapeDtypeStruct((B, H_pad), out_dtype),
            grid_spec=pltpu.PrefetchScalarGridSpec(
                num_scalar_prefetch=0,
                grid=grid,
                in_specs=[
                    pl.BlockSpec((B, tk), lambda j, k: (0, k)),   # x (full B)
                    pl.BlockSpec((tk, tn), lambda j, k: (k, j)),  # W
                    pl.BlockSpec((1, tn), lambda j, k: (0, j)),   # bias
                    pl.BlockSpec((1, tn), lambda j, k: (0, j)),   # gamma
                    pl.BlockSpec((1, tn), lambda j, k: (0, j)),   # beta
                ],
                out_specs=pl.BlockSpec((B, tn), lambda j, k: (0, j)),
                scratch_shapes=[pltpu.VMEM((B, tn), jnp.float32)],
            ),
            compiler_params=pltpu.CompilerParams(
                dimension_semantics=("parallel", "arbitrary"),
                vmem_limit_bytes=64 * 1024 * 1024,
            ),
            cost_estimate=cost,
        )(x_p, w_p, b_p, g_p, be_p)
        return out_p[:, :H]

    # ---- batch_norm=False: also tile the batch dimension --------------------
    tm = 256 if B >= 256 else _round_up(B, 8)
    B_pad = _round_up(B, tm)
    x_p = jnp.pad(x_p, ((0, B_pad - B), (0, 0)))

    grid = (B_pad // tm, H_pad // tn, K_pad // tk)
    kernel = functools.partial(_dense_kernel, act_fun=act_fun)
    out_p = pl.pallas_call(
        kernel,
        out_shape=jax.ShapeDtypeStruct((B_pad, H_pad), out_dtype),
        grid_spec=pltpu.PrefetchScalarGridSpec(
            num_scalar_prefetch=0,
            grid=grid,
            in_specs=[
                pl.BlockSpec((tm, tk), lambda i, j, k: (i, k)),   # x
                pl.BlockSpec((tk, tn), lambda i, j, k: (k, j)),   # W
                pl.BlockSpec((1, tn), lambda i, j, k: (0, j)),    # bias
            ],
            out_specs=pl.BlockSpec((tm, tn), lambda i, j, k: (i, j)),
            scratch_shapes=[pltpu.VMEM((tm, tn), jnp.float32)],
        ),
        compiler_params=pltpu.CompilerParams(
            dimension_semantics=("parallel", "parallel", "arbitrary"),
            vmem_limit_bytes=64 * 1024 * 1024,
        ),
        cost_estimate=cost,
    )(x_p, w_p, b_p)
    return out_p[:B, :H]


# ---------------------------------------------------------------------------
# Demo / correctness check
# ---------------------------------------------------------------------------

if __name__ == "__main__":
    key = jax.random.PRNGKey(0)
    k_x, k_w = jax.random.split(key)

    # Small shapes implied by the module: a (batch, input_size) matrix.
    batch, input_size, hidden_size = 8, 32, 64

    x = jax.random.normal(k_x, (batch, input_size), dtype=jnp.float32)

    # init_module_weights(kaiming_normal_, bias=0.0):
    # kaiming_normal_ on Linear.weight (shape (H, D_in), fan_in = D_in), bias=0.
    std = math.sqrt(2.0 / input_size)
    w_torch_layout = std * jax.random.normal(k_w, (hidden_size, input_size),
                                             dtype=jnp.float32)
    weight_t = w_torch_layout.T                           # (D_in, H)
    bias = jnp.zeros((1, hidden_size), dtype=jnp.float32)
    gamma = jnp.ones((1, hidden_size), dtype=jnp.float32)   # BN affine weight
    beta = jnp.zeros((1, hidden_size), dtype=jnp.float32)   # BN affine bias

    # ---- path 1: Linear -> BatchNorm(batch stats) -> ReLU --------------------
    out_bn = custom_dense(x, weight_t, bias, gamma, beta,
                          act_fun="relu", batch_norm=True)
    jax.block_until_ready(out_bn)

    y_ref = x @ weight_t + bias
    mean = y_ref.mean(axis=0, keepdims=True)
    var = ((y_ref - mean) ** 2).mean(axis=0, keepdims=True)
    y_bn = (y_ref - mean) * jax.lax.rsqrt(var + 1e-5) * gamma + beta
    y_bn = jnp.maximum(y_bn, 0.0)
    assert jnp.allclose(out_bn, y_bn, atol=1e-5, rtol=1e-5), "BN path mismatch"

    # ---- path 2: Linear -> tanh (no BN) --------------------------------------
    out_plain = custom_dense(x, weight_t, bias,
                             act_fun="tanh", batch_norm=False)
    jax.block_until_ready(out_plain)
    y_plain = jnp.tanh(x @ weight_t + bias)
    assert jnp.allclose(out_plain, y_plain, atol=1e-5, rtol=1e-5), \
        "plain path mismatch"

    print("KERNEL_OK")
</pallas_src>

<mosaic_0001>
module attributes {stable_mosaic.version = 11 : i64} {
  func.func @_dense_bn_kernel(%arg0: i32, %arg1: i32, %arg2: memref<8x128xf32, #tpu.memory_space<vmem>>, %arg3: memref<128x128xf32, #tpu.memory_space<vmem>>, %arg4: memref<1x128xf32, #tpu.memory_space<vmem>>, %arg5: memref<1x128xf32, #tpu.memory_space<vmem>>, %arg6: memref<1x128xf32, #tpu.memory_space<vmem>>, %arg7: memref<8x128xf32, #tpu.memory_space<vmem>>, %arg8: memref<8x128xf32, #tpu.memory_space<vmem>>) attributes {dimension_semantics = [#tpu.dimension_semantics<parallel>, #tpu.dimension_semantics<arbitrary>], iteration_bounds = array<i64: 1, 1>, scalar_prefetch = 0 : i64, scratch_operands = 1 : i64, tpu.core_type = #tpu.core_type<tc>, window_params = [{transform_indices = @transform_0, window_bounds = array<i64: 8, 128>}, {transform_indices = @transform_1, window_bounds = array<i64: 128, 128>}, {transform_indices = @transform_2, window_bounds = array<i64: 1, 128>}, {transform_indices = @transform_3, window_bounds = array<i64: 1, 128>}, {transform_indices = @transform_4, window_bounds = array<i64: 1, 128>}, {transform_indices = @transform_5, window_bounds = array<i64: 8, 128>}]} {
    %c0_i32 = arith.constant 0 : i32
    %0 = arith.cmpi eq, %arg1, %c0_i32 : i32
    %1 = arith.extui %0 : i1 to i32
    %c0_i32_0 = arith.constant 0 : i32
    %2 = arith.cmpi ne, %1, %c0_i32_0 : i32
    scf.if %2 {
      %cst_10 = arith.constant 0.000000e+00 : f32
      %12 = vector.broadcast %cst_10 : f32 to vector<8x128xf32>
      %c0_11 = arith.constant 0 : index
      %c0_12 = arith.constant 0 : index
      %13 = vector.load %arg8[%c0_11, %c0_12] : memref<8x128xf32, #tpu.memory_space<vmem>>, vector<8x128xf32>
      tpu.vector_store %arg8[%c0_11, %c0_12], %12 {strides = array<i32>} : memref<8x128xf32, #tpu.memory_space<vmem>>, vector<8x128xf32>,
    } else {
    }
    %c0 = arith.constant 0 : index
    %c0_1 = arith.constant 0 : index
    %3 = vector.load %arg8[%c0, %c0_1] : memref<8x128xf32, #tpu.memory_space<vmem>>, vector<8x128xf32>
    %c0_2 = arith.constant 0 : index
    %c0_3 = arith.constant 0 : index
    %4 = vector.load %arg2[%c0_2, %c0_3] : memref<8x128xf32, #tpu.memory_space<vmem>>, vector<8x128xf32>
    %c0_4 = arith.constant 0 : index
    %c0_5 = arith.constant 0 : index
    %5 = vector.load %arg3[%c0_4, %c0_5] : memref<128x128xf32, #tpu.memory_space<vmem>>, vector<128x128xf32>
    %cst = arith.constant dense<0.000000e+00> : vector<8x128xf32>
    %6 = tpu.matmul %4, %5, %cst {dimension_numbers = #tpu.dot_dimension_numbers<[1], [0], [0], [1], [0, 0, 1, 1], [], []>} : vector<8x128xf32>, vector<128x128xf32>, vector<8x128xf32> -> vector<8x128xf32>
    %7 = arith.addf %3, %6 : vector<8x128xf32>
    %c0_6 = arith.constant 0 : index
    %c0_7 = arith.constant 0 : index
    %8 = vector.load %arg8[%c0_6, %c0_7] : memref<8x128xf32, #tpu.memory_space<vmem>>, vector<8x128xf32>
    tpu.vector_store %arg8[%c0_6, %c0_7], %7 {strides = array<i32>} : memref<8x128xf32, #tpu.memory_space<vmem>>, vector<8x128xf32>,
    %c0_i32_8 = arith.constant 0 : i32
    %9 = arith.cmpi eq, %arg1, %c0_i32_8 : i32
    %10 = arith.extui %9 : i1 to i32
    %c0_i32_9 = arith.constant 0 : i32
    %11 = arith.cmpi ne, %10, %c0_i32_9 : i32
    scf.if %11 {
      %c0_10 = arith.constant 0 : index
      %c0_11 = arith.constant 0 : index
      %12 = vector.load %arg8[%c0_10, %c0_11] : memref<8x128xf32, #tpu.memory_space<vmem>>, vector<8x128xf32>
      %c0_12 = arith.constant 0 : index
      %c0_13 = arith.constant 0 : index
      %13 = vector.load %arg4[%c0_12, %c0_13] : memref<1x128xf32, #tpu.memory_space<vmem>>, vector<1x128xf32>
      %14 = vector.broadcast %13 : vector<1x128xf32> to vector<8x128xf32>
      %15 = arith.addf %12, %14 : vector<8x128xf32>
      %cst_14 = arith.constant dense<0.000000e+00> : vector<128xf32>
      %16 = vector.multi_reduction <add>, %15, %cst_14 [0] : vector<8x128xf32> to vector<128xf32>
      %17 = vector.shape_cast %16 : vector<128xf32> to vector<1x128xf32>
      %cst_15 = arith.constant 8.000000e+00 : f32
      %18 = vector.broadcast %cst_15 : f32 to vector<1x128xf32>
      %19 = arith.divf %17, %18 : vector<1x128xf32>
      %20 = vector.broadcast %19 : vector<1x128xf32> to vector<8x128xf32>
      %21 = arith.subf %15, %20 : vector<8x128xf32>
      %22 = arith.mulf %21, %21 : vector<8x128xf32>
      %cst_16 = arith.constant dense<0.000000e+00> : vector<128xf32>
      %23 = vector.multi_reduction <add>, %22, %cst_16 [0] : vector<8x128xf32> to vector<128xf32>
      %24 = vector.shape_cast %23 : vector<128xf32> to vector<1x128xf32>
      %cst_17 = arith.constant 8.000000e+00 : f32
      %25 = vector.broadcast %cst_17 : f32 to vector<1x128xf32>
      %26 = arith.divf %24, %25 : vector<1x128xf32>
      %cst_18 = arith.constant 9.99999974E-6 : f32
      %27 = vector.broadcast %cst_18 : f32 to vector<1x128xf32>
      %28 = arith.addf %26, %27 : vector<1x128xf32>
      %29 = math.rsqrt %28 : vector<1x128xf32>
      %30 = vector.broadcast %29 : vector<1x128xf32> to vector<8x128xf32>
      %31 = arith.mulf %21, %30 : vector<8x128xf32>
      %c0_19 = arith.constant 0 : index
      %c0_20 = arith.constant 0 : index
      %32 = vector.load %arg5[%c0_19, %c0_20] : memref<1x128xf32, #tpu.memory_space<vmem>>, vector<1x128xf32>
      %33 = vector.broadcast %32 : vector<1x128xf32> to vector<8x128xf32>
      %34 = arith.mulf %31, %33 : vector<8x128xf32>
      %c0_21 = arith.constant 0 : index
      %c0_22 = arith.constant 0 : index
      %35 = vector.load %arg6[%c0_21, %c0_22] : memref<1x128xf32, #tpu.memory_space<vmem>>, vector<1x128xf32>
      %36 = vector.broadcast %35 : vector<1x128xf32> to vector<8x128xf32>
      %37 = arith.addf %34, %36 : vector<8x128xf32>
      %cst_23 = arith.constant 0.000000e+00 : f32
      %38 = vector.broadcast %cst_23 : f32 to vector<8x128xf32>
      %39 = arith.maximumf %37, %38 : vector<8x128xf32>
      %c0_24 = arith.constant 0 : index
      %c0_25 = arith.constant 0 : index
      %40 = vector.load %arg7[%c0_24, %c0_25] : memref<8x128xf32, #tpu.memory_space<vmem>>, vector<8x128xf32>
      tpu.vector_store %arg7[%c0_24, %c0_25], %39 {strides = array<i32>} : memref<8x128xf32, #tpu.memory_space<vmem>>, vector<8x128xf32>,
    } else {
    }
    return
  }
  func.func @transform_0(%arg0: i32, %arg1: i32) -> (i32, i32) {
    %c0_i32 = arith.constant 0 : i32
    %c0_i32_0 = arith.constant 0 : i32
    return %c0_i32, %arg1 : i32, i32
  }
  func.func @transform_1(%arg0: i32, %arg1: i32) -> (i32, i32) {
    %c0_i32 = arith.constant 0 : i32
    return %arg1, %arg0 : i32, i32
  }
  func.func @transform_2(%arg0: i32, %arg1: i32) -> (i32, i32) {
    %c0_i32 = arith.constant 0 : i32
    %c0_i32_0 = arith.constant 0 : i32
    return %c0_i32, %arg0 : i32, i32
  }
  func.func @transform_3(%arg0: i32, %arg1: i32) -> (i32, i32) {
    %c0_i32 = arith.constant 0 : i32
    %c0_i32_0 = arith.constant 0 : i32
    return %c0_i32, %arg0 : i32, i32
  }
  func.func @transform_4(%arg0: i32, %arg1: i32) -> (i32, i32) {
    %c0_i32 = arith.constant 0 : i32
    %c0_i32_0 = arith.constant 0 : i32
    return %c0_i32, %arg0 : i32, i32
  }
  func.func @transform_5(%arg0: i32, %arg1: i32) -> (i32, i32) {
    %c0_i32 = arith.constant 0 : i32
    %c0_i32_0 = arith.constant 0 : i32
    return %c0_i32, %arg0 : i32, i32
  }
}

</mosaic_0001>

<bundles_post_ra>
// kernel: tpu_custom_call.1
= control target key start
LH: loop header
LB: loop body
LE: loop exit
PB: predicated region body
PF: predicated region fallthrough
CT: control target
= control target key end

     0   :  { %10 = vsyncpa [#allocation4], 0  ;;  %s393_s0 = inlined_call_operand.hbm [shape: f32[8,128], index: 0, kind: input, shape index: {}]   ;;  %s394_s1 = inlined_call_operand.hbm [shape: f32[128,128], index: 1, kind: input, shape index: {}]   ;;  %s395_s2 = inlined_call_operand.vmem [shape: f32[1,128], index: 2, kind: input, shape index: {}]   ;;  %s396_s3 = inlined_call_operand.vmem [shape: f32[1,128], index: 3, kind: input, shape index: {}]   ;;  %s397_s4 = inlined_call_operand.vmem [shape: f32[1,128], index: 4, kind: input, shape index: {}]   ;;  %s398_s5 = inlined_call_operand.hbm [shape: f32[8,128], index: 5, kind: output, shape index: {}]  }
   0x1   :  { %11 = vsyncpa [#allocation7], 0 }
   0x2   :  { %12 = vsyncpa [#allocation5], 0  ;;  %s338_s18 = smov [#allocation3]   ;;  %s339_s20 = smov [#allocation6]  }
   0x3   :  { %s19_s19 = sshll.u32 %s338_s18, 4  ;;  %s28_s21 = sshll.u32 %s339_s20, 4  ;;  %s20_s19 = int_to_ptr.vmem [resolvable:$true] %s19_s19  ;;  %s29_s21 = int_to_ptr.vmem [resolvable:$true] %s28_s21 }
   0x4   :  { %s280_s22 = scalar_lea.vmem %s20_s19, 128  ;;  %p285_p1 = scmp.lt.s32.totalorder %s20_s19, %s20_s19 }
   0x5   :  { %p281_p0 = scmp.ne.s32.totalorder %s20_s19, %s280_s22  ;;  %p286_p2 = scmp.lt.s32.totalorder %s280_s22, %s280_s22 }
   0x7   :  { %p287_p3 = por %p286_p2, %p285_p1 }
   0x9   :  { %p288_p4 = pnand %p287_p3, %p281_p0 }
   0xb   :  { %291 = shalt.err (!%p288_p4)
}
   0xc   :  { %22 = dma.hbm_to_vmem [thread:$0]  %s393_s0, 128, %s20_s19, [#allocation4]  }
   0xd   :  { %s300_s25 = scalar_lea.vmem %s29_s21, 2048  ;;  %p305_p6 = scmp.lt.s32.totalorder %s29_s21, %s29_s21 }
   0xe   :  { %p301_p5 = scmp.ne.s32.totalorder %s29_s21, %s300_s25  ;;  %p306_p7 = scmp.lt.s32.totalorder %s300_s25, %s300_s25 }
  0x10   :  { %p307_p8 = por %p306_p7, %p305_p6 }
  0x12   :  { %p308_p9 = pnand %p307_p8, %p301_p5 }
  0x14   :  { %311 = shalt.err (!%p308_p9)
}
  0x15   :  { %s340_s26 = smov 128   ;;  %s341_s27 = smov 8  }
  0x16   :  { %34 = dma.hbm_to_vmem [thread:$0]  %s394_s1, 2048, %s29_s21, [#allocation7], %s340_s26, %s340_s26, %s341_s27  }
  0x17   :  { %332 = dma.done.wait [#allocation4], 128  }
  0x18   :  { %333 = vsyncadd [#allocation4], 4294967168 }
  0x19   :  { %334 = dma.done.wait [#allocation7], 2048  }
  0x1a   :  { %335 = vsyncadd [#allocation7], 4294965248  ;;  %v342_v0 = vmov 0.0   ;;  %vm343_vm0 = vmmov 0   ;;  %v69_v1 = vld [vmem:[#allocation6 + $0x78] sm:$0xff]  ;;  %v68_v2 = vld [vmem:[#allocation6 + $0x70] sm:$0xff] }
  0x1b   :  { %228 = vmatprep.subr.mxu0 %v342_v0  ;;  %260 = vmatprep.mubr.msk.f32.mxu0 %vm343_vm0, %v342_v0  ;;  %v67_v3 = vld [vmem:[#allocation6 + $0x68] sm:$0xff]  ;;  %v66_v4 = vld [vmem:[#allocation6 + $0x60] sm:$0xff]  ;;  %v65_v5 = vld [vmem:[#allocation6 + $0x58] sm:$0xff]  ;;  %s344_s8 = smov [#allocation8]  }
  0x1c   :  { %229 = vmatpush3.msra.mxu0 %v69_v1  ;;  %v64_v6 = vld [vmem:[#allocation6 + $0x50] sm:$0xff]  ;;  %v63_v7 = vld [vmem:[#allocation6 + $0x48] sm:$0xff]  ;;  %v62_v8 = vld [vmem:[#allocation6 + $0x40] sm:$0xff]  ;;  %s198_s9 = sshll.u32 %s344_s8, 4  ;;  %s199_s9 = int_to_ptr.vmem [resolvable:$true] %s198_s9 }
  0x1d   :  { %230 = vmatprep.subr.mxu0 %v342_v0  ;;  %v61_v9 = vld [vmem:[#allocation6 + $0x38] sm:$0xff]  ;;  %v60_v10 = vld [vmem:[#allocation6 + $0x30] sm:$0xff]  ;;  %v59_v11 = vld [vmem:[#allocation6 + $0x28] sm:$0xff]  ;;  %s312_s10 = scalar_lea.vmem %s199_s9, 128  ;;  %p317_p11 = scmp.lt.s32.totalorder %s199_s9, %s199_s9 }
  0x1e   :  { %231 = vmatpush3.msra.mxu0 %v68_v2  ;;  %v58_v12 = vld [vmem:[#allocation6 + $0x20] sm:$0xff]  ;;  %v57_v13 = vld [vmem:[#allocation6 + $0x18] sm:$0xff]  ;;  %v56_v14 = vld [vmem:[#allocation6 + $0x10] sm:$0xff]  ;;  %p313_p10 = scmp.ne.s32.totalorder %s199_s9, %s312_s10  ;;  %p318_p12 = scmp.lt.s32.totalorder %s312_s10, %s312_s10 }
  0x1f   :  { %232 = vmatprep.subr.mxu0 %v342_v0  ;;  %v55_v15 = vld [vmem:[#allocation6 + $0x8] sm:$0xff]  ;;  %v54_v16 = vld [vmem:[#allocation6] sm:$0xff]  ;;  %v53_v17 = vld [vmem:[#allocation3] sm:$0xff] }
  0x20   :  { %233 = vmatpush3.msra.mxu0 %v67_v3  ;;  %v208_v18 = vld [vmem:[%s395_s2] ss:$0 sm:$0xff]  ;;  %p319_p13 = por %p318_p12, %p317_p11 }
  0x21   :  { %234 = vmatprep.subr.mxu0 %v342_v0  ;;  %v209_v40 = vld [vmem:[%s396_s3] ss:$0 sm:$0xff] }
  0x22   :  { %235 = vmatpush3.msra.mxu0 %v66_v4  ;;  %v210_v42 = vld [vmem:[%s397_s4] ss:$0 sm:$0xff]  ;;  %p320_p0 = pnand %p319_p13, %p313_p10 }
  0x23   :  { %236 = vmatprep.subr.mxu0 %v342_v0 }
  0x24   :  { %237 = vmatpush3.msra.mxu0 %v65_v5 }
  0x25   :  { %238 = vmatprep.subr.mxu0 %v342_v0 }
  0x26   :  { %239 = vmatpush3.msra.mxu0 %v64_v6 }
  0x27   :  { %240 = vmatprep.subr.mxu0 %v342_v0 }
  0x28   :  { %241 = vmatpush3.msra.mxu0 %v63_v7 }
  0x29   :  { %242 = vmatprep.subr.mxu0 %v342_v0 }
  0x2a   :  { %243 = vmatpush3.msra.mxu0 %v62_v8 }
  0x2b   :  { %244 = vmatprep.subr.mxu0 %v342_v0 }
  0x2c   :  { %245 = vmatpush3.msra.mxu0 %v61_v9 }
  0x2d   :  { %246 = vmatprep.subr.mxu0 %v342_v0 }
  0x2e   :  { %247 = vmatpush3.msra.mxu0 %v60_v10 }
  0x2f   :  { %248 = vmatprep.subr.mxu0 %v342_v0 }
  0x30   :  { %249 = vmatpush3.msra.mxu0 %v59_v11 }
  0x31   :  { %250 = vmatprep.subr.mxu0 %v342_v0 }
  0x32   :  { %251 = vmatpush3.msra.mxu0 %v58_v12 }
  0x33   :  { %252 = vmatprep.subr.mxu0 %v342_v0 }
  0x34   :  { %253 = vmatpush3.msra.mxu0 %v57_v13 }
  0x35   :  { %254 = vmatprep.subr.mxu0 %v342_v0 }
  0x36   :  { %255 = vmatpush3.msra.mxu0 %v56_v14 }
  0x37   :  { %256 = vmatprep.subr.mxu0 %v342_v0 }
  0x38   :  { %257 = vmatpush3.msra.mxu0 %v55_v15 }
  0x39   :  { %258 = vmatprep.subr.mxu0 %v342_v0 }
  0x3a   :  { %259 = vmatpush3.msra.mxu0 %v54_v16 }
  0x3b   :  { %261 = vmatmul.mubr.f32.vlgmr.msra.gmra.mxu0 %v53_v17 }
  0xfb   :  { %v136_v19 = vpop.f32.mrf.mxu0 }
  0xfc   :  { %v153_v20 = vadd.f32 %v208_v18, %v136_v19 }
  0xfd   :  { %v262_v21 = vpop.f32.mrf.mxu0 }
  0xfe   :  { %v154_v22 = vrot.slane %v153_v20, 4 }
 0x100   :  { %v155_v23 = vadd.f32 %v154_v22, %v153_v20 }
 0x102   :  { %v156_v24 = vrot.slane %v155_v23, 2 }
 0x104   :  { %v157_v25 = vadd.f32 %v156_v24, %v155_v23 }
 0x106   :  { %v158_v26 = vrot.slane %v157_v25, 1 }
 0x108   :  { %v159_v27 = vadd.f32 %v158_v26, %v157_v25 }
 0x10a   :  { %v161_v28 = vmul.f32 0.125, %v159_v27 }
 0x10c   :  { %v162_v29 = vsub.f32 %v153_v20, %v161_v28 }
 0x10e   :  { %v163_v30 = vmul.f32 %v162_v29, %v162_v29 }
 0x110   :  { %v164_v31 = vrot.slane %v163_v30, 4 }
 0x112   :  { %v165_v32 = vadd.f32 %v164_v31, %v163_v30 }
 0x114   :  { %v166_v33 = vrot.slane %v165_v32, 2 }
 0x116   :  { %v167_v34 = vadd.f32 %v166_v33, %v165_v32 }
 0x118   :  { %v168_v35 = vrot.slane %v167_v34, 1 }
 0x11a   :  { %v169_v36 = vadd.f32 %v168_v35, %v167_v34 }
 0x11c   :  { %v170_v37 = vmul.f32 0.125, %v169_v36 }
 0x11e   :  { %v171_v38 = vadd.f32 1e-05, %v170_v37 }
 0x120   :  { %270 = vrsqrt.f32 %v171_v38 }
 0x12d   :  { %v271_v39 = vpop.eup %270 }
 0x12e   :  { %v173_v41 = vmul.f32 %v271_v39, %v162_v29 }
 0x130   :  { %v181_v43 = vmul.f32 %v209_v40, %v173_v41 }
 0x132   :  { %v189_v44 = vadd.f32 %v210_v42, %v181_v43 }
 0x134   :  { %v190_v45 = vmax.f32 %v189_v44, 0.0 }
 0x136   :  { %191 = vst [vmem:[#allocation8] sm:$0xff] %v190_v45 }
 0x137   :  { %323 = shalt.err (!%p320_p0)
}
 0x138   :  { %201 = dma.vmem_to_hbm [thread:$0]  %s199_s9, 128, %s398_s5, [#allocation5]  }
 0x139   :  { %336 = dma.done.wait [#allocation5], 128  }
 0x13a   :  { %337 = vsyncadd [#allocation5], 4294967168 }
 0x13b   :  { %205 = vsyncpa [#allocation4], 1 }
 0x13c   :  { %206 = vsyncpa [#allocation7], 1 }
 0x13d   :  { %207 = vsyncpa [#allocation5], 1 }

</bundles_post_ra>
